<compile_context>
chip_gen: v5e
topology: v5e:2x2
jax: 0.10.0
libtpu: 0.0.40
codegen_flags: <defaults>
</compile_context>

<pallas_src>
import math

import jax
import jax.numpy as jnp
from jax.experimental import pallas as pl
from jax.experimental.pallas import tpu as pltpu


def _copy_kernel(x_ref, o_ref):
    # Identity copy of the current (block_rows, lanes) slab.
    o_ref[...] = x_ref[...]


_LANE_CANDIDATES = (2048, 1024, 512, 256, 128)   # lane-dense widths (x128)
_TARGET_BLOCK_BYTES = 2 * 1024 * 1024            # ~2 MiB/block; 4x pipelined
                                                 # footprint fits every gen's
                                                 # default scoped-VMEM limit.


def flatten_pallas(x):
    """Pallas equivalent of torch's x.view(x.shape[0], -1) (materialized)."""
    B = x.shape[0]
    F = int(math.prod(x.shape[1:]))
    N = B * F
    itemsize = jnp.dtype(x.dtype).itemsize

    flat = x.reshape(N)  # metadata-only view

    # Pick the largest lane width (multiple of 128) dividing N; otherwise pad
    # the flat buffer up to a multiple of 128 and slice the result afterwards.
    lanes = next((c for c in _LANE_CANDIDATES if N % c == 0), None)
    pad = 0
    if lanes is None:
        lanes = 128
        pad = (-N) % lanes
        flat = jnp.pad(flat, (0, pad))
    n_padded = N + pad
    rows = n_padded // lanes

    # Row-block size: multiple of 8 (or the full row extent) targeting ~2 MiB.
    rows_target = max(1, _TARGET_BLOCK_BYTES // (lanes * itemsize))
    if rows <= rows_target or rows < 8:
        block_rows = rows                      # single (full-extent) row block
    else:
        block_rows = max(8, (rows_target // 8) * 8)
        # Prefer an exact multiple-of-8 divisor of `rows`; otherwise keep the
        # target size and let Pallas handle the partial last block.
        cand = block_rows
        while cand >= 8 and rows % cand != 0:
            cand -= 8
        if cand >= 8:
            block_rows = cand

    grid = (pl.cdiv(rows, block_rows),)
    slab = flat.reshape(rows, lanes)           # metadata-only view

    out = pl.pallas_call(
        _copy_kernel,
        out_shape=jax.ShapeDtypeStruct((rows, lanes), x.dtype),
        grid_spec=pltpu.PrefetchScalarGridSpec(
            num_scalar_prefetch=0,
            grid=grid,
            in_specs=[pl.BlockSpec((block_rows, lanes), lambda i: (i, 0))],
            out_specs=pl.BlockSpec((block_rows, lanes), lambda i: (i, 0)),
        ),
        compiler_params=pltpu.CompilerParams(
            dimension_semantics=("parallel",),   # shard copy across v7x's 2 TCs
        ),
        # Output is bit-identical to the input slab: alias to avoid a second
        # B*F HBM allocation (XLA may donate / elide when the input is dead).
        input_output_aliases={0: 0},
        # Pure-bandwidth op: tell the scheduler there is no compute here.
        cost_estimate=pl.CostEstimate(
            flops=0,
            transcendentals=0,
            bytes_accessed=2 * n_padded * itemsize,
        ),
    )(slab)

    out = out.reshape(n_padded)
    if pad:
        out = out[:N]
    return out.reshape(B, F)


if __name__ == "__main__":
    key = jax.random.PRNGKey(0)

    # Primary case: NCHW conv feature map, matching the PyTorch module's use.
    x = jax.random.normal(key, (2, 4, 16, 16), dtype=jnp.float32)
    out = jax.block_until_ready(flatten_pallas(x))
    ref = x.reshape(x.shape[0], -1)
    assert out.shape == (2, 4 * 16 * 16), out.shape
    assert out.dtype == x.dtype
    assert jnp.array_equal(out, ref), "mismatch vs reference flatten"

    # Secondary case: feature size not a multiple of 128 (exercises pad path).
    key2 = jax.random.PRNGKey(1)
    y = jax.random.normal(key2, (2, 3, 5, 7), dtype=jnp.float32)
    out2 = jax.block_until_ready(flatten_pallas(y))
    ref2 = y.reshape(y.shape[0], -1)
    assert out2.shape == ref2.shape, out2.shape
    assert jnp.array_equal(out2, ref2), "mismatch vs reference flatten (ragged)"

    print("KERNEL_OK")
</pallas_src>

<mosaic_0001>
module attributes {stable_mosaic.version = 11 : i64} {
  func.func @_copy_kernel(%arg0: i32, %arg1: memref<1x2048xf32, #tpu.memory_space<vmem>>, %arg2: memref<1x2048xf32, #tpu.memory_space<vmem>>) attributes {dimension_semantics = [#tpu.dimension_semantics<parallel>], iteration_bounds = array<i64: 1>, scalar_prefetch = 0 : i64, scratch_operands = 0 : i64, tpu.core_type = #tpu.core_type<tc>, window_params = [{transform_indices = @transform_0, window_bounds = array<i64: 1, 2048>}, {transform_indices = @transform_1, window_bounds = array<i64: 1, 2048>}]} {
    %c0 = arith.constant 0 : index
    %c0_0 = arith.constant 0 : index
    %0 = vector.load %arg1[%c0, %c0_0] : memref<1x2048xf32, #tpu.memory_space<vmem>>, vector<1x2048xf32>
    %c0_1 = arith.constant 0 : index
    %c0_2 = arith.constant 0 : index
    %1 = vector.load %arg2[%c0_1, %c0_2] : memref<1x2048xf32, #tpu.memory_space<vmem>>, vector<1x2048xf32>
    tpu.vector_store %arg2[%c0_1, %c0_2], %0 {strides = array<i32>} : memref<1x2048xf32, #tpu.memory_space<vmem>>, vector<1x2048xf32>,
    return
  }
  func.func @transform_0(%arg0: i32) -> (i32, i32) {
    %c0_i32 = arith.constant 0 : i32
    %c0_i32_0 = arith.constant 0 : i32
    return %arg0, %c0_i32 : i32, i32
  }
  func.func @transform_1(%arg0: i32) -> (i32, i32) {
    %c0_i32 = arith.constant 0 : i32
    %c0_i32_0 = arith.constant 0 : i32
    return %arg0, %c0_i32 : i32, i32
  }
}

</mosaic_0001>

<bundles_post_ra>
// kernel: tpu_custom_call.1
= control target key start
LH: loop header
LB: loop body
LE: loop exit
PB: predicated region body
PF: predicated region fallthrough
CT: control target
= control target key end

     0   :  { %6 = vsyncpa [#allocation3], 0  ;;  %s116_s0 = inlined_call_operand.hbm [shape: f32[1,2048], index: 0, kind: input, shape index: {}, may-alias: {0,1}]   ;;  %s117_s1 = inlined_call_operand.hbm [shape: f32[1,2048], index: 1, kind: output, shape index: {}, may-alias: {0,1}]  }
   0x1   :  { %7 = vsyncpa [#allocation4], 0  ;;  %s13_s8 = sshll.u32 %s116_s0, 4  ;;  %s98_s9 = smov [#allocation2]   ;;  %s14_s8 = int_to_ptr.hbm [resolvable:$true] %s13_s8 }
   0x2   :  { %s15_s10 = sshll.u32 %s98_s9, 4  ;;  %s16_s10 = int_to_ptr.vmem [resolvable:$true] %s15_s10 }
   0x3   :  { %18 = dma.hbm_to_vmem [thread:$0]  %s14_s8, 256, %s16_s10, [#allocation3]  }
   0x4   :  { %94 = dma.done.wait [#allocation3], 256  }
   0x5   :  { %95 = vsyncadd [#allocation3], 4294967040  ;;  %s99_s11 = smov [#allocation5]   ;;  %s34_s15 = sshll.u32 %s117_s1, 4  ;;  %v23_v0 = vld [vmem:[#allocation2] sm:$0xff]  ;;  %v24_v1 = vld [vmem:[#allocation2 + $0x8] sm:$0xff]  ;;  %s35_s15 = int_to_ptr.hbm [resolvable:$true] %s34_s15 }
   0x6   :  { %s32_s12 = sshll.u32 %s99_s11, 4  ;;  %25 = vst [vmem:[#allocation5] sm:$0xff] %v23_v0  ;;  %s33_s12 = int_to_ptr.vmem [resolvable:$true] %s32_s12 }
   0x7   :  { %26 = vst [vmem:[#allocation5 + $0x8] sm:$0xff] %v24_v1 }
   0x8   :  { %37 = dma.vmem_to_hbm [thread:$0]  %s33_s12, 256, %s35_s15, [#allocation4]  }
   0x9   :  { %96 = dma.done.wait [#allocation4], 256  }
   0xa   :  { %97 = vsyncadd [#allocation4], 4294967040 }
   0xb   :  { %42 = vsyncpa [#allocation3], 1 }
   0xc   :  { %43 = vsyncpa [#allocation4], 1 }

</bundles_post_ra>
